<compile_context>
chip_gen: v6e
topology: v6e:2x2x1
jax: 0.10.0
libtpu: 0.0.40
codegen_flags: <defaults>
</compile_context>

<pallas_src>
import jax
import jax.numpy as jnp
import numpy as np
from jax import lax
from jax.experimental import pallas as pl
from jax.experimental.pallas import tpu as pltpu

# ----------------------------- configuration --------------------------------
ACTIVATION = "relu"
CONV_FILTERS = [[4, 8, 3, 1], "maxpool_2x2", [8, 16, 3, 2]]
FC_LAYER_SIZE = 32
ENCODER_EXTRA_FC_LAYERS = 2
INPUT_SHAPE = (4, 16, 16)          # (C, H, W)
DOWNSAMPLE = False

# Static shape algebra for this conv stack.
C0, H0, W0 = INPUT_SHAPE                       # 4, 16, 16
_, C1, K1, S1 = CONV_FILTERS[0]                # 8, 3, 1
H1 = (H0 - K1) // S1 + 1                       # 14
W1 = (W0 - K1) // S1 + 1                       # 14
HP, WP = H1 // 2, W1 // 2                      # 7, 7
_, C2, K2, S2 = CONV_FILTERS[2]                # 16, 3, 2
H2 = (HP - K2) // S2 + 1                       # 3
W2 = (WP - K2) // S2 + 1                       # 3
CONV_HEAD_OUT = C2 * H2 * W2                   # 144


def conv_head_out_size():
    c, h, w = INPUT_SHAPE
    for layer in CONV_FILTERS:
        if layer == "maxpool_2x2":
            h, w = h // 2, w // 2
        else:
            _, out_ch, fs, s = layer
            c, h, w = out_ch, (h - fs) // s + 1, (w - fs) // s + 1
    if DOWNSAMPLE:
        h, w = h // 2, w // 2
    return c * h * w


# ------------------------------ fused kernel ---------------------------------

def _conv_encoder_kernel(x_ref, m1e_ref, m1o_ref, b1_ref, m2_ref, b2_ref,
                         wf1_ref, bf1_ref, wf2_ref, bf2_ref, o_ref, wm_ref):
    """Fused conv1 + maxpool2x2 + conv2 + fc1 + fc2 for one batch element.

    Activations use a channels-minor 2-D layout (rows = H, cols = W*C), so
    every conv layer is a short sum of 2-D MXU matmuls against banded weight
    matrices precomputed at init (no im2col, no in-kernel reshape/transpose).
    """
    f32 = jnp.float32
    bf16 = jnp.bfloat16

    # ---- conv1 (3x3, s1, 4->8) + width half of the 2x2 maxpool -------------
    # m1e / m1o hold the banded weights for even / odd output columns, so the
    # width-pair max of the pool is simply max(acc_e, acc_o): no lane shuffles.
    acc_e = jnp.zeros((H1, WP * C1), f32)
    acc_o = jnp.zeros((H1, WP * C1), f32)
    for di in range(K1):                                  # kernel-row offset
        xi = x_ref[0, di:di + H1, :]                      # (14, W0*C0) bf16
        acc_e += jnp.dot(xi, m1e_ref[di], preferred_element_type=f32)
        acc_o += jnp.dot(xi, m1o_ref[di], preferred_element_type=f32)
    # bias + ReLU commute with the max (bias depends only on the out channel)
    wm_ref[...] = jnp.maximum(jnp.maximum(acc_e, acc_o) + b1_ref[...], 0.0)

    # ---- height half of the maxpool + conv2 (3x3, s2, 8->16) + fc1 ---------
    # Each conv2 output row is produced and immediately folded into the fc1
    # accumulator (fc1 weight rows were pre-permuted to PyTorch's NCHW flatten
    # order), so the flatten/permute never materializes.
    y = jnp.zeros((1, FC_LAYER_SIZE), f32)
    for ho in range(H2):
        acc2 = jnp.zeros((1, W2 * C2), f32)
        for di in range(K2):
            r = S2 * ho + di                              # pooled-row index
            prow = jnp.maximum(wm_ref[2 * r:2 * r + 1, :],
                               wm_ref[2 * r + 1:2 * r + 2, :])   # (1, WP*C1)
            acc2 += jnp.dot(prow.astype(bf16), m2_ref[di],
                            preferred_element_type=f32)
        c2_row = jnp.maximum(acc2 + b2_ref[...], 0.0)     # (1, W2*C2)
        y += jnp.dot(c2_row.astype(bf16), wf1_ref[ho],
                     preferred_element_type=f32)
    y = jnp.maximum(y + bf1_ref[...], 0.0)

    # ---- fc2 ----------------------------------------------------------------
    y = jnp.dot(y.astype(bf16), wf2_ref[...], preferred_element_type=f32)
    o_ref[0] = jnp.maximum(y + bf2_ref[...], 0.0)


# --------------------------- host-side wrappers ------------------------------

def conv_encoder_forward(x_nchw, prep):
    """Pallas implementation of ConvEncoder.forward (single fused kernel)."""
    n = x_nchw.shape[0]
    # NCHW -> channels-minor (N, H, W*C) layout; bf16 operands for the MXU.
    x = jnp.transpose(x_nchw, (0, 2, 3, 1)).reshape(n, H0, W0 * C0)
    x = x.astype(jnp.bfloat16)

    out = pl.pallas_call(
        _conv_encoder_kernel,
        out_shape=jax.ShapeDtypeStruct((n, 1, FC_LAYER_SIZE), jnp.float32),
        grid=(n,),
        in_specs=[
            pl.BlockSpec((1, H0, W0 * C0), lambda i: (i, 0, 0)),          # x
            pl.BlockSpec((K1, W0 * C0, WP * C1), lambda i: (0, 0, 0)),    # m1e
            pl.BlockSpec((K1, W0 * C0, WP * C1), lambda i: (0, 0, 0)),    # m1o
            pl.BlockSpec((1, WP * C1), lambda i: (0, 0)),                 # b1
            pl.BlockSpec((K2, WP * C1, W2 * C2), lambda i: (0, 0, 0)),    # m2
            pl.BlockSpec((1, W2 * C2), lambda i: (0, 0)),                 # b2
            pl.BlockSpec((H2, W2 * C2, FC_LAYER_SIZE), lambda i: (0, 0, 0)),
            pl.BlockSpec((1, FC_LAYER_SIZE), lambda i: (0, 0)),           # bf1
            pl.BlockSpec((FC_LAYER_SIZE, FC_LAYER_SIZE), lambda i: (0, 0)),
            pl.BlockSpec((1, FC_LAYER_SIZE), lambda i: (0, 0)),           # bf2
        ],
        out_specs=pl.BlockSpec((1, 1, FC_LAYER_SIZE), lambda i: (i, 0, 0)),
        scratch_shapes=[pltpu.VMEM((H1, WP * C1), jnp.float32)],
        compiler_params=pltpu.CompilerParams(
            dimension_semantics=("parallel",)),           # batch -> megacore
    )(x, prep["m1e"], prep["m1o"], prep["b1t"], prep["m2"], prep["b2t"],
      prep["wf1"], prep["bf1"], prep["wf2t"], prep["bf2"])
    return out.reshape(n, FC_LAYER_SIZE)


def prepare_encoder_params(params):
    """One-time (init) transform of PyTorch-layout params into kernel layouts:
    banded conv matrices, tiled biases, row-permuted fc1 weight."""
    assert len(CONV_FILTERS) == 3 and CONV_FILTERS[1] == "maxpool_2x2"
    assert not DOWNSAMPLE and H1 % 2 == 0 and W1 % 2 == 0
    assert conv_head_out_size() == CONV_HEAD_OUT

    (w1, b1, _), (w2, b2, _) = params["conv"]
    (wf1, bf1), (wf2, bf2) = params["fc"]
    w1 = np.asarray(w1, np.float32); b1 = np.asarray(b1, np.float32)
    w2 = np.asarray(w2, np.float32); b2 = np.asarray(b2, np.float32)
    wf1 = np.asarray(wf1, np.float32); bf1 = np.asarray(bf1, np.float32)
    wf2 = np.asarray(wf2, np.float32); bf2 = np.asarray(bf2, np.float32)

    # conv1 -> two banded matrices (even / odd output columns) so the maxpool's
    # width reduction becomes max(acc_even, acc_odd) inside the kernel.
    m1e = np.zeros((K1, W0 * C0, WP * C1), np.float32)
    m1o = np.zeros((K1, W0 * C0, WP * C1), np.float32)
    for di in range(K1):
        for wo in range(W1):
            dst = m1e if wo % 2 == 0 else m1o
            pw = wo // 2
            for dj in range(K1):
                wj = wo * S1 + dj
                dst[di, wj * C0:(wj + 1) * C0, pw * C1:(pw + 1) * C1] = \
                    w1[:, :, di, dj].T                    # (Cin, Cout) block

    # conv2 -> one banded matrix per kernel-row offset (stride 2 in width).
    m2 = np.zeros((K2, WP * C1, W2 * C2), np.float32)
    for di in range(K2):
        for wo in range(W2):
            for dj in range(K2):
                wj = wo * S2 + dj
                m2[di, wj * C1:(wj + 1) * C1, wo * C2:(wo + 1) * C2] = \
                    w2[:, :, di, dj].T

    # fc1: rows permuted so the in-kernel (h, w, c) activation layout feeds the
    # PyTorch NCHW-flattened weight directly (c*H2*W2 + h*W2 + w ordering).
    wf1p = np.zeros((H2, W2 * C2, FC_LAYER_SIZE), np.float32)
    for h in range(H2):
        for w in range(W2):
            for c in range(C2):
                wf1p[h, w * C2 + c, :] = wf1[:, c * H2 * W2 + h * W2 + w]

    f32, bf16 = jnp.float32, jnp.bfloat16
    return dict(
        m1e=jnp.asarray(m1e, bf16), m1o=jnp.asarray(m1o, bf16),
        b1t=jnp.asarray(np.tile(b1, WP)[None, :], f32),
        m2=jnp.asarray(m2, bf16),
        b2t=jnp.asarray(np.tile(b2, W2)[None, :], f32),
        wf1=jnp.asarray(wf1p, bf16),
        bf1=jnp.asarray(bf1[None, :], f32),
        wf2t=jnp.asarray(wf2.T, bf16),
        bf2=jnp.asarray(bf2[None, :], f32),
    )


def init_params(key):
    """Deterministic synthetic parameters (PyTorch shape conventions)."""
    params = {"conv": [], "fc": []}
    keys = iter(jax.random.split(key, 32))
    for layer in CONV_FILTERS:
        if layer == "maxpool_2x2":
            continue
        inp_ch, out_ch, fs, stride = layer
        w = jax.random.normal(next(keys), (out_ch, inp_ch, fs, fs), jnp.float32) * 0.1
        b = jax.random.normal(next(keys), (out_ch,), jnp.float32) * 0.1
        params["conv"].append((w, b, stride))
    in_size = conv_head_out_size()
    for i in range(ENCODER_EXTRA_FC_LAYERS):
        size = in_size if i == 0 else FC_LAYER_SIZE
        w = jax.random.normal(next(keys), (FC_LAYER_SIZE, size), jnp.float32) * 0.1
        b = jax.random.normal(next(keys), (FC_LAYER_SIZE,), jnp.float32) * 0.1
        params["fc"].append((w, b))
    return params


def conv_encoder_reference(x_nchw, params):
    """Pure-JAX reference of the same forward pass (correctness check)."""
    y = x_nchw
    ci = 0
    for layer in CONV_FILTERS:
        if layer == "maxpool_2x2":
            y = lax.reduce_window(y, -jnp.inf, lax.max,
                                  (1, 1, 2, 2), (1, 1, 2, 2), "VALID")
        else:
            w, b, stride = params["conv"][ci]
            ci += 1
            y = lax.conv_general_dilated(
                y, w, (stride, stride), "VALID",
                dimension_numbers=("NCHW", "OIHW", "NCHW"),
                precision=lax.Precision.HIGHEST)
            y = jnp.maximum(y + b[None, :, None, None], 0.0)
    if DOWNSAMPLE:
        y = lax.reduce_window(y, -jnp.inf, lax.max,
                              (1, 1, 2, 2), (1, 1, 2, 2), "VALID")
    y = y.reshape(y.shape[0], -1)
    for (w, b) in params["fc"]:
        y = jnp.maximum(
            jnp.dot(y, w.T, precision=lax.Precision.HIGHEST) + b, 0.0)
    return y


if __name__ == "__main__":
    key = jax.random.PRNGKey(0)
    k_x, k_p = jax.random.split(key)
    batch = 2
    x = jax.random.normal(k_x, (batch,) + INPUT_SHAPE, jnp.float32)  # NCHW
    params = init_params(k_p)
    prep = prepare_encoder_params(params)     # init-time weight reshuffle

    fwd = jax.jit(conv_encoder_forward)
    out = jax.block_until_ready(fwd(x, prep))

    assert out.shape == (batch, FC_LAYER_SIZE), out.shape
    assert bool(jnp.all(jnp.isfinite(out)))

    ref = jax.block_until_ready(conv_encoder_reference(x, params))
    max_err = float(jnp.max(jnp.abs(out - ref)))
    assert jnp.allclose(out, ref, atol=3e-2, rtol=3e-2), max_err

    print("KERNEL_OK")
</pallas_src>

<mosaic_0001>
module attributes {stable_mosaic.version = 11 : i64} {
  func.func @_conv_encoder_kernel(%arg0: i32, %arg1: memref<1x16x64xbf16, #tpu.memory_space<vmem>>, %arg2: memref<3x64x56xbf16, #tpu.memory_space<vmem>>, %arg3: memref<3x64x56xbf16, #tpu.memory_space<vmem>>, %arg4: memref<1x56xf32, #tpu.memory_space<vmem>>, %arg5: memref<3x56x48xbf16, #tpu.memory_space<vmem>>, %arg6: memref<1x48xf32, #tpu.memory_space<vmem>>, %arg7: memref<3x48x32xbf16, #tpu.memory_space<vmem>>, %arg8: memref<1x32xf32, #tpu.memory_space<vmem>>, %arg9: memref<32x32xbf16, #tpu.memory_space<vmem>>, %arg10: memref<1x32xf32, #tpu.memory_space<vmem>>, %arg11: memref<1x1x32xf32, #tpu.memory_space<vmem>>, %arg12: memref<14x56xf32, #tpu.memory_space<vmem>>) attributes {dimension_semantics = [#tpu.dimension_semantics<parallel>], iteration_bounds = array<i64: 2>, scalar_prefetch = 0 : i64, scratch_operands = 1 : i64, tpu.core_type = #tpu.core_type<tc>, window_params = [{transform_indices = @transform_0, window_bounds = array<i64: 1, 16, 64>}, {pipeline_mode = #tpu.pipeline_mode<synchronous>, transform_indices = @transform_1, window_bounds = array<i64: 3, 64, 56>}, {pipeline_mode = #tpu.pipeline_mode<synchronous>, transform_indices = @transform_2, window_bounds = array<i64: 3, 64, 56>}, {pipeline_mode = #tpu.pipeline_mode<synchronous>, transform_indices = @transform_3, window_bounds = array<i64: 1, 56>}, {pipeline_mode = #tpu.pipeline_mode<synchronous>, transform_indices = @transform_4, window_bounds = array<i64: 3, 56, 48>}, {pipeline_mode = #tpu.pipeline_mode<synchronous>, transform_indices = @transform_5, window_bounds = array<i64: 1, 48>}, {pipeline_mode = #tpu.pipeline_mode<synchronous>, transform_indices = @transform_6, window_bounds = array<i64: 3, 48, 32>}, {pipeline_mode = #tpu.pipeline_mode<synchronous>, transform_indices = @transform_7, window_bounds = array<i64: 1, 32>}, {pipeline_mode = #tpu.pipeline_mode<synchronous>, transform_indices = @transform_8, window_bounds = array<i64: 32, 32>}, {pipeline_mode = #tpu.pipeline_mode<synchronous>, transform_indices = @transform_9, window_bounds = array<i64: 1, 32>}, {transform_indices = @transform_10, window_bounds = array<i64: 1, 1, 32>}]} {
    %cst = arith.constant 0.000000e+00 : f32
    %0 = vector.broadcast %cst : f32 to vector<14x56xf32>
    %cst_0 = arith.constant 0.000000e+00 : f32
    %1 = vector.broadcast %cst_0 : f32 to vector<14x56xf32>
    %c0 = arith.constant 0 : index
    %c0_1 = arith.constant 0 : index
    %c0_2 = arith.constant 0 : index
    %2 = vector.load %arg1[%c0, %c0_1, %c0_2] : memref<1x16x64xbf16, #tpu.memory_space<vmem>>, vector<1x14x64xbf16>
    %3 = vector.shape_cast %2 : vector<1x14x64xbf16> to vector<14x64xbf16>
    %c0_3 = arith.constant 0 : index
    %c0_4 = arith.constant 0 : index
    %c0_5 = arith.constant 0 : index
    %4 = vector.load %arg2[%c0_3, %c0_4, %c0_5] : memref<3x64x56xbf16, #tpu.memory_space<vmem>>, vector<1x64x56xbf16>
    %5 = vector.shape_cast %4 : vector<1x64x56xbf16> to vector<64x56xbf16>
    %cst_6 = arith.constant dense<0.000000e+00> : vector<14x56xf32>
    %6 = tpu.matmul %3, %5, %cst_6 {dimension_numbers = #tpu.dot_dimension_numbers<[1], [0], [0], [1], [0, 0, 1, 1], [], []>} : vector<14x64xbf16>, vector<64x56xbf16>, vector<14x56xf32> -> vector<14x56xf32>
    %7 = arith.addf %0, %6 : vector<14x56xf32>
    %c0_7 = arith.constant 0 : index
    %c0_8 = arith.constant 0 : index
    %c0_9 = arith.constant 0 : index
    %8 = vector.load %arg3[%c0_7, %c0_8, %c0_9] : memref<3x64x56xbf16, #tpu.memory_space<vmem>>, vector<1x64x56xbf16>
    %9 = vector.shape_cast %8 : vector<1x64x56xbf16> to vector<64x56xbf16>
    %cst_10 = arith.constant dense<0.000000e+00> : vector<14x56xf32>
    %10 = tpu.matmul %3, %9, %cst_10 {dimension_numbers = #tpu.dot_dimension_numbers<[1], [0], [0], [1], [0, 0, 1, 1], [], []>} : vector<14x64xbf16>, vector<64x56xbf16>, vector<14x56xf32> -> vector<14x56xf32>
    %11 = arith.addf %1, %10 : vector<14x56xf32>
    %c0_11 = arith.constant 0 : index
    %c1 = arith.constant 1 : index
    %c0_12 = arith.constant 0 : index
    %12 = vector.load %arg1[%c0_11, %c1, %c0_12] : memref<1x16x64xbf16, #tpu.memory_space<vmem>>, vector<1x14x64xbf16>
    %13 = vector.shape_cast %12 : vector<1x14x64xbf16> to vector<14x64xbf16>
    %c1_13 = arith.constant 1 : index
    %c0_14 = arith.constant 0 : index
    %c0_15 = arith.constant 0 : index
    %14 = vector.load %arg2[%c1_13, %c0_14, %c0_15] : memref<3x64x56xbf16, #tpu.memory_space<vmem>>, vector<1x64x56xbf16>
    %15 = vector.shape_cast %14 : vector<1x64x56xbf16> to vector<64x56xbf16>
    %cst_16 = arith.constant dense<0.000000e+00> : vector<14x56xf32>
    %16 = tpu.matmul %13, %15, %cst_16 {dimension_numbers = #tpu.dot_dimension_numbers<[1], [0], [0], [1], [0, 0, 1, 1], [], []>} : vector<14x64xbf16>, vector<64x56xbf16>, vector<14x56xf32> -> vector<14x56xf32>
    %17 = arith.addf %7, %16 : vector<14x56xf32>
    %c1_17 = arith.constant 1 : index
    %c0_18 = arith.constant 0 : index
    %c0_19 = arith.constant 0 : index
    %18 = vector.load %arg3[%c1_17, %c0_18, %c0_19] : memref<3x64x56xbf16, #tpu.memory_space<vmem>>, vector<1x64x56xbf16>
    %19 = vector.shape_cast %18 : vector<1x64x56xbf16> to vector<64x56xbf16>
    %cst_20 = arith.constant dense<0.000000e+00> : vector<14x56xf32>
    %20 = tpu.matmul %13, %19, %cst_20 {dimension_numbers = #tpu.dot_dimension_numbers<[1], [0], [0], [1], [0, 0, 1, 1], [], []>} : vector<14x64xbf16>, vector<64x56xbf16>, vector<14x56xf32> -> vector<14x56xf32>
    %21 = arith.addf %11, %20 : vector<14x56xf32>
    %c0_21 = arith.constant 0 : index
    %c2 = arith.constant 2 : index
    %c0_22 = arith.constant 0 : index
    %22 = vector.load %arg1[%c0_21, %c2, %c0_22] : memref<1x16x64xbf16, #tpu.memory_space<vmem>>, vector<1x14x64xbf16>
    %23 = vector.shape_cast %22 : vector<1x14x64xbf16> to vector<14x64xbf16>
    %c2_23 = arith.constant 2 : index
    %c0_24 = arith.constant 0 : index
    %c0_25 = arith.constant 0 : index
    %24 = vector.load %arg2[%c2_23, %c0_24, %c0_25] : memref<3x64x56xbf16, #tpu.memory_space<vmem>>, vector<1x64x56xbf16>
    %25 = vector.shape_cast %24 : vector<1x64x56xbf16> to vector<64x56xbf16>
    %cst_26 = arith.constant dense<0.000000e+00> : vector<14x56xf32>
    %26 = tpu.matmul %23, %25, %cst_26 {dimension_numbers = #tpu.dot_dimension_numbers<[1], [0], [0], [1], [0, 0, 1, 1], [], []>} : vector<14x64xbf16>, vector<64x56xbf16>, vector<14x56xf32> -> vector<14x56xf32>
    %27 = arith.addf %17, %26 : vector<14x56xf32>
    %c2_27 = arith.constant 2 : index
    %c0_28 = arith.constant 0 : index
    %c0_29 = arith.constant 0 : index
    %28 = vector.load %arg3[%c2_27, %c0_28, %c0_29] : memref<3x64x56xbf16, #tpu.memory_space<vmem>>, vector<1x64x56xbf16>
    %29 = vector.shape_cast %28 : vector<1x64x56xbf16> to vector<64x56xbf16>
    %cst_30 = arith.constant dense<0.000000e+00> : vector<14x56xf32>
    %30 = tpu.matmul %23, %29, %cst_30 {dimension_numbers = #tpu.dot_dimension_numbers<[1], [0], [0], [1], [0, 0, 1, 1], [], []>} : vector<14x64xbf16>, vector<64x56xbf16>, vector<14x56xf32> -> vector<14x56xf32>
    %31 = arith.addf %21, %30 : vector<14x56xf32>
    %32 = arith.maximumf %27, %31 : vector<14x56xf32>
    %c0_31 = arith.constant 0 : index
    %c0_32 = arith.constant 0 : index
    %33 = vector.load %arg4[%c0_31, %c0_32] : memref<1x56xf32, #tpu.memory_space<vmem>>, vector<1x56xf32>
    %34 = vector.broadcast %33 : vector<1x56xf32> to vector<14x56xf32>
    %35 = arith.addf %32, %34 : vector<14x56xf32>
    %cst_33 = arith.constant 0.000000e+00 : f32
    %36 = vector.broadcast %cst_33 : f32 to vector<14x56xf32>
    %37 = arith.maximumf %35, %36 : vector<14x56xf32>
    %c0_34 = arith.constant 0 : index
    %c0_35 = arith.constant 0 : index
    %38 = vector.load %arg12[%c0_34, %c0_35] : memref<14x56xf32, #tpu.memory_space<vmem>>, vector<14x56xf32>
    tpu.vector_store %arg12[%c0_34, %c0_35], %37 {strides = array<i32>} : memref<14x56xf32, #tpu.memory_space<vmem>>, vector<14x56xf32>,
    %cst_36 = arith.constant 0.000000e+00 : f32
    %39 = vector.broadcast %cst_36 : f32 to vector<1x32xf32>
    %cst_37 = arith.constant 0.000000e+00 : f32
    %40 = vector.broadcast %cst_37 : f32 to vector<1x48xf32>
    %c0_38 = arith.constant 0 : index
    %c0_39 = arith.constant 0 : index
    %41 = vector.load %arg12[%c0_38, %c0_39] : memref<14x56xf32, #tpu.memory_space<vmem>>, vector<1x56xf32>
    %c1_40 = arith.constant 1 : index
    %c0_41 = arith.constant 0 : index
    %42 = vector.load %arg12[%c1_40, %c0_41] : memref<14x56xf32, #tpu.memory_space<vmem>>, vector<1x56xf32>
    %43 = arith.maximumf %41, %42 : vector<1x56xf32>
    %44 = arith.truncf %43 : vector<1x56xf32> to vector<1x56xbf16>
    %c0_42 = arith.constant 0 : index
    %c0_43 = arith.constant 0 : index
    %c0_44 = arith.constant 0 : index
    %45 = vector.load %arg5[%c0_42, %c0_43, %c0_44] : memref<3x56x48xbf16, #tpu.memory_space<vmem>>, vector<1x56x48xbf16>
    %46 = vector.shape_cast %45 : vector<1x56x48xbf16> to vector<56x48xbf16>
    %cst_45 = arith.constant dense<0.000000e+00> : vector<1x48xf32>
    %47 = tpu.matmul %44, %46, %cst_45 {dimension_numbers = #tpu.dot_dimension_numbers<[1], [0], [0], [1], [0, 0, 1, 1], [], []>} : vector<1x56xbf16>, vector<56x48xbf16>, vector<1x48xf32> -> vector<1x48xf32>
    %48 = arith.addf %40, %47 : vector<1x48xf32>
    %c2_46 = arith.constant 2 : index
    %c0_47 = arith.constant 0 : index
    %49 = vector.load %arg12[%c2_46, %c0_47] : memref<14x56xf32, #tpu.memory_space<vmem>>, vector<1x56xf32>
    %c3 = arith.constant 3 : index
    %c0_48 = arith.constant 0 : index
    %50 = vector.load %arg12[%c3, %c0_48] : memref<14x56xf32, #tpu.memory_space<vmem>>, vector<1x56xf32>
    %51 = arith.maximumf %49, %50 : vector<1x56xf32>
    %52 = arith.truncf %51 : vector<1x56xf32> to vector<1x56xbf16>
    %c1_49 = arith.constant 1 : index
    %c0_50 = arith.constant 0 : index
    %c0_51 = arith.constant 0 : index
    %53 = vector.load %arg5[%c1_49, %c0_50, %c0_51] : memref<3x56x48xbf16, #tpu.memory_space<vmem>>, vector<1x56x48xbf16>
    %54 = vector.shape_cast %53 : vector<1x56x48xbf16> to vector<56x48xbf16>
    %cst_52 = arith.constant dense<0.000000e+00> : vector<1x48xf32>
    %55 = tpu.matmul %52, %54, %cst_52 {dimension_numbers = #tpu.dot_dimension_numbers<[1], [0], [0], [1], [0, 0, 1, 1], [], []>} : vector<1x56xbf16>, vector<56x48xbf16>, vector<1x48xf32> -> vector<1x48xf32>
    %56 = arith.addf %48, %55 : vector<1x48xf32>
    %c4 = arith.constant 4 : index
    %c0_53 = arith.constant 0 : index
    %57 = vector.load %arg12[%c4, %c0_53] : memref<14x56xf32, #tpu.memory_space<vmem>>, vector<1x56xf32>
    %c5 = arith.constant 5 : index
    %c0_54 = arith.constant 0 : index
    %58 = vector.load %arg12[%c5, %c0_54] : memref<14x56xf32, #tpu.memory_space<vmem>>, vector<1x56xf32>
    %59 = arith.maximumf %57, %58 : vector<1x56xf32>
    %60 = arith.truncf %59 : vector<1x56xf32> to vector<1x56xbf16>
    %c2_55 = arith.constant 2 : index
    %c0_56 = arith.constant 0 : index
    %c0_57 = arith.constant 0 : index
    %61 = vector.load %arg5[%c2_55, %c0_56, %c0_57] : memref<3x56x48xbf16, #tpu.memory_space<vmem>>, vector<1x56x48xbf16>
    %62 = vector.shape_cast %61 : vector<1x56x48xbf16> to vector<56x48xbf16>
    %cst_58 = arith.constant dense<0.000000e+00> : vector<1x48xf32>
    %63 = tpu.matmul %60, %62, %cst_58 {dimension_numbers = #tpu.dot_dimension_numbers<[1], [0], [0], [1], [0, 0, 1, 1], [], []>} : vector<1x56xbf16>, vector<56x48xbf16>, vector<1x48xf32> -> vector<1x48xf32>
    %64 = arith.addf %56, %63 : vector<1x48xf32>
    %c0_59 = arith.constant 0 : index
    %c0_60 = arith.constant 0 : index
    %65 = vector.load %arg6[%c0_59, %c0_60] : memref<1x48xf32, #tpu.memory_space<vmem>>, vector<1x48xf32>
    %66 = arith.addf %64, %65 : vector<1x48xf32>
    %cst_61 = arith.constant 0.000000e+00 : f32
    %67 = vector.broadcast %cst_61 : f32 to vector<1x48xf32>
    %68 = arith.maximumf %66, %67 : vector<1x48xf32>
    %69 = arith.truncf %68 : vector<1x48xf32> to vector<1x48xbf16>
    %c0_62 = arith.constant 0 : index
    %c0_63 = arith.constant 0 : index
    %c0_64 = arith.constant 0 : index
    %70 = vector.load %arg7[%c0_62, %c0_63, %c0_64] : memref<3x48x32xbf16, #tpu.memory_space<vmem>>, vector<1x48x32xbf16>
    %71 = vector.shape_cast %70 : vector<1x48x32xbf16> to vector<48x32xbf16>
    %cst_65 = arith.constant dense<0.000000e+00> : vector<1x32xf32>
    %72 = tpu.matmul %69, %71, %cst_65 {dimension_numbers = #tpu.dot_dimension_numbers<[1], [0], [0], [1], [0, 0, 1, 1], [], []>} : vector<1x48xbf16>, vector<48x32xbf16>, vector<1x32xf32> -> vector<1x32xf32>
    %73 = arith.addf %39, %72 : vector<1x32xf32>
    %cst_66 = arith.constant 0.000000e+00 : f32
    %74 = vector.broadcast %cst_66 : f32 to vector<1x48xf32>
    %c4_67 = arith.constant 4 : index
    %c0_68 = arith.constant 0 : index
    %75 = vector.load %arg12[%c4_67, %c0_68] : memref<14x56xf32, #tpu.memory_space<vmem>>, vector<1x56xf32>
    %c5_69 = arith.constant 5 : index
    %c0_70 = arith.constant 0 : index
    %76 = vector.load %arg12[%c5_69, %c0_70] : memref<14x56xf32, #tpu.memory_space<vmem>>, vector<1x56xf32>
    %77 = arith.maximumf %75, %76 : vector<1x56xf32>
    %78 = arith.truncf %77 : vector<1x56xf32> to vector<1x56xbf16>
    %c0_71 = arith.constant 0 : index
    %c0_72 = arith.constant 0 : index
    %c0_73 = arith.constant 0 : index
    %79 = vector.load %arg5[%c0_71, %c0_72, %c0_73] : memref<3x56x48xbf16, #tpu.memory_space<vmem>>, vector<1x56x48xbf16>
    %80 = vector.shape_cast %79 : vector<1x56x48xbf16> to vector<56x48xbf16>
    %cst_74 = arith.constant dense<0.000000e+00> : vector<1x48xf32>
    %81 = tpu.matmul %78, %80, %cst_74 {dimension_numbers = #tpu.dot_dimension_numbers<[1], [0], [0], [1], [0, 0, 1, 1], [], []>} : vector<1x56xbf16>, vector<56x48xbf16>, vector<1x48xf32> -> vector<1x48xf32>
    %82 = arith.addf %74, %81 : vector<1x48xf32>
    %c6 = arith.constant 6 : index
    %c0_75 = arith.constant 0 : index
    %83 = vector.load %arg12[%c6, %c0_75] : memref<14x56xf32, #tpu.memory_space<vmem>>, vector<1x56xf32>
    %c7 = arith.constant 7 : index
    %c0_76 = arith.constant 0 : index
    %84 = vector.load %arg12[%c7, %c0_76] : memref<14x56xf32, #tpu.memory_space<vmem>>, vector<1x56xf32>
    %85 = arith.maximumf %83, %84 : vector<1x56xf32>
    %86 = arith.truncf %85 : vector<1x56xf32> to vector<1x56xbf16>
    %c1_77 = arith.constant 1 : index
    %c0_78 = arith.constant 0 : index
    %c0_79 = arith.constant 0 : index
    %87 = vector.load %arg5[%c1_77, %c0_78, %c0_79] : memref<3x56x48xbf16, #tpu.memory_space<vmem>>, vector<1x56x48xbf16>
    %88 = vector.shape_cast %87 : vector<1x56x48xbf16> to vector<56x48xbf16>
    %cst_80 = arith.constant dense<0.000000e+00> : vector<1x48xf32>
    %89 = tpu.matmul %86, %88, %cst_80 {dimension_numbers = #tpu.dot_dimension_numbers<[1], [0], [0], [1], [0, 0, 1, 1], [], []>} : vector<1x56xbf16>, vector<56x48xbf16>, vector<1x48xf32> -> vector<1x48xf32>
    %90 = arith.addf %82, %89 : vector<1x48xf32>
    %c8 = arith.constant 8 : index
    %c0_81 = arith.constant 0 : index
    %91 = vector.load %arg12[%c8, %c0_81] : memref<14x56xf32, #tpu.memory_space<vmem>>, vector<1x56xf32>
    %c9 = arith.constant 9 : index
    %c0_82 = arith.constant 0 : index
    %92 = vector.load %arg12[%c9, %c0_82] : memref<14x56xf32, #tpu.memory_space<vmem>>, vector<1x56xf32>
    %93 = arith.maximumf %91, %92 : vector<1x56xf32>
    %94 = arith.truncf %93 : vector<1x56xf32> to vector<1x56xbf16>
    %c2_83 = arith.constant 2 : index
    %c0_84 = arith.constant 0 : index
    %c0_85 = arith.constant 0 : index
    %95 = vector.load %arg5[%c2_83, %c0_84, %c0_85] : memref<3x56x48xbf16, #tpu.memory_space<vmem>>, vector<1x56x48xbf16>
    %96 = vector.shape_cast %95 : vector<1x56x48xbf16> to vector<56x48xbf16>
    %cst_86 = arith.constant dense<0.000000e+00> : vector<1x48xf32>
    %97 = tpu.matmul %94, %96, %cst_86 {dimension_numbers = #tpu.dot_dimension_numbers<[1], [0], [0], [1], [0, 0, 1, 1], [], []>} : vector<1x56xbf16>, vector<56x48xbf16>, vector<1x48xf32> -> vector<1x48xf32>
    %98 = arith.addf %90, %97 : vector<1x48xf32>
    %c0_87 = arith.constant 0 : index
    %c0_88 = arith.constant 0 : index
    %99 = vector.load %arg6[%c0_87, %c0_88] : memref<1x48xf32, #tpu.memory_space<vmem>>, vector<1x48xf32>
    %100 = arith.addf %98, %99 : vector<1x48xf32>
    %cst_89 = arith.constant 0.000000e+00 : f32
    %101 = vector.broadcast %cst_89 : f32 to vector<1x48xf32>
    %102 = arith.maximumf %100, %101 : vector<1x48xf32>
    %103 = arith.truncf %102 : vector<1x48xf32> to vector<1x48xbf16>
    %c1_90 = arith.constant 1 : index
    %c0_91 = arith.constant 0 : index
    %c0_92 = arith.constant 0 : index
    %104 = vector.load %arg7[%c1_90, %c0_91, %c0_92] : memref<3x48x32xbf16, #tpu.memory_space<vmem>>, vector<1x48x32xbf16>
    %105 = vector.shape_cast %104 : vector<1x48x32xbf16> to vector<48x32xbf16>
    %cst_93 = arith.constant dense<0.000000e+00> : vector<1x32xf32>
    %106 = tpu.matmul %103, %105, %cst_93 {dimension_numbers = #tpu.dot_dimension_numbers<[1], [0], [0], [1], [0, 0, 1, 1], [], []>} : vector<1x48xbf16>, vector<48x32xbf16>, vector<1x32xf32> -> vector<1x32xf32>
    %107 = arith.addf %73, %106 : vector<1x32xf32>
    %cst_94 = arith.constant 0.000000e+00 : f32
    %108 = vector.broadcast %cst_94 : f32 to vector<1x48xf32>
    %c8_95 = arith.constant 8 : index
    %c0_96 = arith.constant 0 : index
    %109 = vector.load %arg12[%c8_95, %c0_96] : memref<14x56xf32, #tpu.memory_space<vmem>>, vector<1x56xf32>
    %c9_97 = arith.constant 9 : index
    %c0_98 = arith.constant 0 : index
    %110 = vector.load %arg12[%c9_97, %c0_98] : memref<14x56xf32, #tpu.memory_space<vmem>>, vector<1x56xf32>
    %111 = arith.maximumf %109, %110 : vector<1x56xf32>
    %112 = arith.truncf %111 : vector<1x56xf32> to vector<1x56xbf16>
    %c0_99 = arith.constant 0 : index
    %c0_100 = arith.constant 0 : index
    %c0_101 = arith.constant 0 : index
    %113 = vector.load %arg5[%c0_99, %c0_100, %c0_101] : memref<3x56x48xbf16, #tpu.memory_space<vmem>>, vector<1x56x48xbf16>
    %114 = vector.shape_cast %113 : vector<1x56x48xbf16> to vector<56x48xbf16>
    %cst_102 = arith.constant dense<0.000000e+00> : vector<1x48xf32>
    %115 = tpu.matmul %112, %114, %cst_102 {dimension_numbers = #tpu.dot_dimension_numbers<[1], [0], [0], [1], [0, 0, 1, 1], [], []>} : vector<1x56xbf16>, vector<56x48xbf16>, vector<1x48xf32> -> vector<1x48xf32>
    %116 = arith.addf %108, %115 : vector<1x48xf32>
    %c10 = arith.constant 10 : index
    %c0_103 = arith.constant 0 : index
    %117 = vector.load %arg12[%c10, %c0_103] : memref<14x56xf32, #tpu.memory_space<vmem>>, vector<1x56xf32>
    %c11 = arith.constant 11 : index
    %c0_104 = arith.constant 0 : index
    %118 = vector.load %arg12[%c11, %c0_104] : memref<14x56xf32, #tpu.memory_space<vmem>>, vector<1x56xf32>
    %119 = arith.maximumf %117, %118 : vector<1x56xf32>
    %120 = arith.truncf %119 : vector<1x56xf32> to vector<1x56xbf16>
    %c1_105 = arith.constant 1 : index
    %c0_106 = arith.constant 0 : index
    %c0_107 = arith.constant 0 : index
    %121 = vector.load %arg5[%c1_105, %c0_106, %c0_107] : memref<3x56x48xbf16, #tpu.memory_space<vmem>>, vector<1x56x48xbf16>
    %122 = vector.shape_cast %121 : vector<1x56x48xbf16> to vector<56x48xbf16>
    %cst_108 = arith.constant dense<0.000000e+00> : vector<1x48xf32>
    %123 = tpu.matmul %120, %122, %cst_108 {dimension_numbers = #tpu.dot_dimension_numbers<[1], [0], [0], [1], [0, 0, 1, 1], [], []>} : vector<1x56xbf16>, vector<56x48xbf16>, vector<1x48xf32> -> vector<1x48xf32>
    %124 = arith.addf %116, %123 : vector<1x48xf32>
    %c12 = arith.constant 12 : index
    %c0_109 = arith.constant 0 : index
    %125 = vector.load %arg12[%c12, %c0_109] : memref<14x56xf32, #tpu.memory_space<vmem>>, vector<1x56xf32>
    %c13 = arith.constant 13 : index
    %c0_110 = arith.constant 0 : index
    %126 = vector.load %arg12[%c13, %c0_110] : memref<14x56xf32, #tpu.memory_space<vmem>>, vector<1x56xf32>
    %127 = arith.maximumf %125, %126 : vector<1x56xf32>
    %128 = arith.truncf %127 : vector<1x56xf32> to vector<1x56xbf16>
    %c2_111 = arith.constant 2 : index
    %c0_112 = arith.constant 0 : index
    %c0_113 = arith.constant 0 : index
    %129 = vector.load %arg5[%c2_111, %c0_112, %c0_113] : memref<3x56x48xbf16, #tpu.memory_space<vmem>>, vector<1x56x48xbf16>
    %130 = vector.shape_cast %129 : vector<1x56x48xbf16> to vector<56x48xbf16>
    %cst_114 = arith.constant dense<0.000000e+00> : vector<1x48xf32>
    %131 = tpu.matmul %128, %130, %cst_114 {dimension_numbers = #tpu.dot_dimension_numbers<[1], [0], [0], [1], [0, 0, 1, 1], [], []>} : vector<1x56xbf16>, vector<56x48xbf16>, vector<1x48xf32> -> vector<1x48xf32>
    %132 = arith.addf %124, %131 : vector<1x48xf32>
    %c0_115 = arith.constant 0 : index
    %c0_116 = arith.constant 0 : index
    %133 = vector.load %arg6[%c0_115, %c0_116] : memref<1x48xf32, #tpu.memory_space<vmem>>, vector<1x48xf32>
    %134 = arith.addf %132, %133 : vector<1x48xf32>
    %cst_117 = arith.constant 0.000000e+00 : f32
    %135 = vector.broadcast %cst_117 : f32 to vector<1x48xf32>
    %136 = arith.maximumf %134, %135 : vector<1x48xf32>
    %137 = arith.truncf %136 : vector<1x48xf32> to vector<1x48xbf16>
    %c2_118 = arith.constant 2 : index
    %c0_119 = arith.constant 0 : index
    %c0_120 = arith.constant 0 : index
    %138 = vector.load %arg7[%c2_118, %c0_119, %c0_120] : memref<3x48x32xbf16, #tpu.memory_space<vmem>>, vector<1x48x32xbf16>
    %139 = vector.shape_cast %138 : vector<1x48x32xbf16> to vector<48x32xbf16>
    %cst_121 = arith.constant dense<0.000000e+00> : vector<1x32xf32>
    %140 = tpu.matmul %137, %139, %cst_121 {dimension_numbers = #tpu.dot_dimension_numbers<[1], [0], [0], [1], [0, 0, 1, 1], [], []>} : vector<1x48xbf16>, vector<48x32xbf16>, vector<1x32xf32> -> vector<1x32xf32>
    %141 = arith.addf %107, %140 : vector<1x32xf32>
    %c0_122 = arith.constant 0 : index
    %c0_123 = arith.constant 0 : index
    %142 = vector.load %arg8[%c0_122, %c0_123] : memref<1x32xf32, #tpu.memory_space<vmem>>, vector<1x32xf32>
    %143 = arith.addf %141, %142 : vector<1x32xf32>
    %cst_124 = arith.constant 0.000000e+00 : f32
    %144 = vector.broadcast %cst_124 : f32 to vector<1x32xf32>
    %145 = arith.maximumf %143, %144 : vector<1x32xf32>
    %146 = arith.truncf %145 : vector<1x32xf32> to vector<1x32xbf16>
    %c0_125 = arith.constant 0 : index
    %c0_126 = arith.constant 0 : index
    %147 = vector.load %arg9[%c0_125, %c0_126] : memref<32x32xbf16, #tpu.memory_space<vmem>>, vector<32x32xbf16>
    %cst_127 = arith.constant dense<0.000000e+00> : vector<1x32xf32>
    %148 = tpu.matmul %146, %147, %cst_127 {dimension_numbers = #tpu.dot_dimension_numbers<[1], [0], [0], [1], [0, 0, 1, 1], [], []>} : vector<1x32xbf16>, vector<32x32xbf16>, vector<1x32xf32> -> vector<1x32xf32>
    %c0_128 = arith.constant 0 : index
    %c0_129 = arith.constant 0 : index
    %149 = vector.load %arg10[%c0_128, %c0_129] : memref<1x32xf32, #tpu.memory_space<vmem>>, vector<1x32xf32>
    %150 = arith.addf %148, %149 : vector<1x32xf32>
    %cst_130 = arith.constant 0.000000e+00 : f32
    %151 = vector.broadcast %cst_130 : f32 to vector<1x32xf32>
    %152 = arith.maximumf %150, %151 : vector<1x32xf32>
    %c0_131 = arith.constant 0 : index
    %c0_132 = arith.constant 0 : index
    %c0_133 = arith.constant 0 : index
    %153 = vector.load %arg11[%c0_131, %c0_132, %c0_133] : memref<1x1x32xf32, #tpu.memory_space<vmem>>, vector<1x1x32xf32>
    %154 = vector.shape_cast %153 : vector<1x1x32xf32> to vector<1x32xf32>
    %155 = vector.shape_cast %152 : vector<1x32xf32> to vector<1x1x32xf32>
    tpu.vector_store %arg11[%c0_131, %c0_132, %c0_133], %155 {strides = array<i32>} : memref<1x1x32xf32, #tpu.memory_space<vmem>>, vector<1x1x32xf32>,
    return
  }
  func.func @transform_0(%arg0: i32) -> (i32, i32, i32) {
    %c0_i32 = arith.constant 0 : i32
    %c0_i32_0 = arith.constant 0 : i32
    %c0_i32_1 = arith.constant 0 : i32
    return %arg0, %c0_i32, %c0_i32_0 : i32, i32, i32
  }
  func.func @transform_1(%arg0: i32) -> (i32, i32, i32) {
    %c0_i32 = arith.constant 0 : i32
    %c0_i32_0 = arith.constant 0 : i32
    %c0_i32_1 = arith.constant 0 : i32
    %c0_i32_2 = arith.constant 0 : i32
    return %c0_i32, %c0_i32_0, %c0_i32_1 : i32, i32, i32
  }
  func.func @transform_2(%arg0: i32) -> (i32, i32, i32) {
    %c0_i32 = arith.constant 0 : i32
    %c0_i32_0 = arith.constant 0 : i32
    %c0_i32_1 = arith.constant 0 : i32
    %c0_i32_2 = arith.constant 0 : i32
    return %c0_i32, %c0_i32_0, %c0_i32_1 : i32, i32, i32
  }
  func.func @transform_3(%arg0: i32) -> (i32, i32) {
    %c0_i32 = arith.constant 0 : i32
    %c0_i32_0 = arith.constant 0 : i32
    %c0_i32_1 = arith.constant 0 : i32
    return %c0_i32, %c0_i32_0 : i32, i32
  }
  func.func @transform_4(%arg0: i32) -> (i32, i32, i32) {
    %c0_i32 = arith.constant 0 : i32
    %c0_i32_0 = arith.constant 0 : i32
    %c0_i32_1 = arith.constant 0 : i32
    %c0_i32_2 = arith.constant 0 : i32
    return %c0_i32, %c0_i32_0, %c0_i32_1 : i32, i32, i32
  }
  func.func @transform_5(%arg0: i32) -> (i32, i32) {
    %c0_i32 = arith.constant 0 : i32
    %c0_i32_0 = arith.constant 0 : i32
    %c0_i32_1 = arith.constant 0 : i32
    return %c0_i32, %c0_i32_0 : i32, i32
  }
  func.func @transform_6(%arg0: i32) -> (i32, i32, i32) {
    %c0_i32 = arith.constant 0 : i32
    %c0_i32_0 = arith.constant 0 : i32
    %c0_i32_1 = arith.constant 0 : i32
    %c0_i32_2 = arith.constant 0 : i32
    return %c0_i32, %c0_i32_0, %c0_i32_1 : i32, i32, i32
  }
  func.func @transform_7(%arg0: i32) -> (i32, i32) {
    %c0_i32 = arith.constant 0 : i32
    %c0_i32_0 = arith.constant 0 : i32
    %c0_i32_1 = arith.constant 0 : i32
    return %c0_i32, %c0_i32_0 : i32, i32
  }
  func.func @transform_8(%arg0: i32) -> (i32, i32) {
    %c0_i32 = arith.constant 0 : i32
    %c0_i32_0 = arith.constant 0 : i32
    %c0_i32_1 = arith.constant 0 : i32
    return %c0_i32, %c0_i32_0 : i32, i32
  }
  func.func @transform_9(%arg0: i32) -> (i32, i32) {
    %c0_i32 = arith.constant 0 : i32
    %c0_i32_0 = arith.constant 0 : i32
    %c0_i32_1 = arith.constant 0 : i32
    return %c0_i32, %c0_i32_0 : i32, i32
  }
  func.func @transform_10(%arg0: i32) -> (i32, i32, i32) {
    %c0_i32 = arith.constant 0 : i32
    %c0_i32_0 = arith.constant 0 : i32
    %c0_i32_1 = arith.constant 0 : i32
    return %arg0, %c0_i32, %c0_i32_0 : i32, i32, i32
  }
}

</mosaic_0001>

<bundles_post_ra>
// kernel: conv_encoder_forward.1
= control target key start
LH: loop header
LB: loop body
LE: loop exit
PB: predicated region body
PF: predicated region fallthrough
CT: control target
= control target key end

     0   :  { %15 = vsyncpa [#allocation4], 0  ;;  %s2832_s0 = inlined_call_operand.vmem [shape: bf16[2,16,64], index: 0, kind: input, shape index: {}]   ;;  %s2833_s1 = inlined_call_operand.vmem [shape: bf16[3,64,56], index: 1, kind: input, shape index: {}]   ;;  %s2834_s2 = inlined_call_operand.vmem [shape: bf16[3,64,56], index: 2, kind: input, shape index: {}]   ;;  %s2835_s3 = inlined_call_operand.vmem [shape: f32[1,56], index: 3, kind: input, shape index: {}]   ;;  %s2836_s4 = inlined_call_operand.vmem [shape: bf16[3,56,48], index: 4, kind: input, shape index: {}]   ;;  %s2837_s5 = inlined_call_operand.vmem [shape: f32[1,48], index: 5, kind: input, shape index: {}]   ;;  %s2838_s6 = inlined_call_operand.vmem [shape: bf16[3,48,32], index: 6, kind: input, shape index: {}]   ;;  %s2839_s7 = inlined_call_operand.vmem [shape: f32[1,32], index: 7, kind: input, shape index: {}]   ;;  %s2840_s8 = inlined_call_operand.vmem [shape: bf16[32,32], index: 8, kind: input, shape index: {}]   ;;  %s2841_s9 = inlined_call_operand.vmem [shape: f32[1,32], index: 9, kind: input, shape index: {}]   ;;  %s2842_s10 = inlined_call_operand.hbm [shape: f32[2,1,32], index: 10, kind: output, shape index: {}]  }
   0x1   :  { %17 = vsyncpa [#allocation4 + $0x1], 0  ;;  %s2370_s13 = smov 0   ;;  %s2372_s14 = smov 0  }
   0x2   :  { %s2374_s15 = smov 0   ;;  %s2376_s16 = smov 0  }
   0x3 LB: > { %s2391_s17 = sadd.s32 4294967295, %s2310_s16   ;;  %s1713_s18 = sadd.s32 4294967294, %s2310_s16   ;;  %s2310_s16 = sphi %s2376_s16, %s2848_s16   ;;  %s2306_s15 = sphi %s2374_s15, %s2847_s15   ;;  %s2302_s14 = sphi %s2372_s14, %s2846_s14   ;;  %s2298_s13 = sphi %s2370_s13, %s2845_s13  }
   0x4   : > { %s2395_s19 = sadd.s32 1, %s2310_s16   ;;  %s245_s20 = sadd.s32 1, %s2306_s15 }
   0x5   : > { %s242_s21 = ssub.s32 %s2310_s16, %s2395_s19  ;;  %p255_p0 = scmp.ne.s32.totalorder %s2306_s15, %s2302_s14 }
   0x6   : > { %p243_p1 = scmp.eq.s32.totalorder %s242_s21, 0  ;;  %p256_p2 = scmp.eq.s32.totalorder %s2391_s17, 1 }
   0x7   : > { %p261_p3 = scmp.ne.s32.totalorder %s2302_s14, %s2298_s13  ;;  %p262_p4 = scmp.eq.s32.totalorder %s1713_s18, 1 }
   0x8   : > { %s2406_s22 = scalar_select %p243_p1, %s2306_s15, %s245_s20  }
   0x9   : > { %p2408_p5 = por %p256_p2, %p255_p0  ;;  %p2412_p6 = por %p262_p4, %p261_p3 }
   0xa   : > { %p1716_p7 = scmp.ge.s32.totalorder %s2310_s16, 1  ;;  %p315_p8 = scmp.lt.s32.totalorder %s2310_s16, 3 }
   0xc   : > { %p316_p9 = pnand %p1716_p7, %p315_p8 }
   0xd   : > { %p352_p10 = scmp.lt.s32.totalorder (!%p316_p9), %s2391_s17, 1  ;;  %s350_s20 = sand.u32 (!%p316_p9), 1, %s2302_s14  }
   0xe   : > { %319 = sbr.rel (%p316_p9) target bundleno = 1162 (0x48a), region = 60  ;;  %s351_s26 = scalar_lea.vmem (!%p316_p9), [#allocation3], %s350_s20 }
   0xf   : > { %s1658_s27 = sshll.u32 (!%p316_p9), %s351_s26, 4  ;;  %s2793_s27 = int_to_ptr.vmem [resolvable:$true] %s1658_s27 }
  0x10   : > { %s2250_s12 = scalar_lea.vmem (!%p316_p9), %s2793_s27, 16 }
  0x11   : > { %p2251_p11 = scmp.ne.s32.totalorder (!%p316_p9), %s2793_s27, %s2250_s12 }
  0x13   : > { %v2200_v0 = vld [vmem:[%s2833_s1 + $0x38] sm:$0xff]   ;;  %v2312_v1 = vmov 0.0   ;;  %v2202_v3 = vld [vmem:[%s2833_s1 + $0x30] sm:$0xff]   ;;  %vm2313_vm0 = vmmov 0   ;;  %s353_s18 = scalar_select %p352_p10, %s2391_s17, 1  ;;  %v2204_v5 = vld [vmem:[%s2833_s1 + $0x28] sm:$0xff]  }
  0x14   : > { %1941 = vmatprep.subr.bf16.mxu0 %v2312_v1  ;;  %1953 = vmatprep.subr.bf16.mxu1 %v2312_v1  ;;  %v2201_v2 = vld [vmem:[%s2833_s1 + $0x18] sm:$0xff]   ;;  %v2203_v4 = vld [vmem:[%s2833_s1 + $0x10] sm:$0xff]   ;;  %v2205_v6 = vld [vmem:[%s2833_s1 + $0x8] sm:$0xff]   ;;  %vm422_vm1 = vcmask 523264   ;;  %vm901_vm2 = vcmask 1043456   ;;  %vm850_vm3 = vcmask 457728   ;;  %p2252_p12 = pnand %p2251_p11, %p2408_p5 }
  0x15   : > { %1942 = vmatpush3.bf16.msra.mxu0 %v2200_v0  ;;  %1949 = vmatprep.mubr.msk.bf16.mxu0 %vm2313_vm0, %v2312_v1  ;;  %s1850_s25 = sshll.u32 %s353_s18, 3  ;;  %v2206_v7 = vld [vmem:[%s2833_s1 + $0x20] sm:$0xff]   ;;  %v2210_v17 = vld [vmem:[%s2834_s2 + $0x38] sm:$0xff]   ;;  %v2212_v20 = vld [vmem:[%s2834_s2 + $0x30] sm:$0xff]   ;;  %vm852_vm4 = vcmask 455680   ;;  %vm1265_vm5 = vcmask 392192  }
  0x16   : > { %1954 = vmatpush3.bf16.msra.mxu1 %v2201_v2  ;;  %1943 = vmatprep.subr.bf16.mxu0 %v2312_v1  ;;  %s2450_s30 = scalar_lea.vmem %s2832_s0, %s1850_s25  ;;  %v2207_v10 = vld [vmem:[%s2833_s1] sm:$0xff]   ;;  %v2211_v19 = vld [vmem:[%s2834_s2 + $0x18] sm:$0xff]   ;;  %v2213_v21 = vld [vmem:[%s2834_s2 + $0x10] sm:$0xff]   ;;  %vm1598_vm6 = vcmask 261120   ;;  %s1847_s25 = sshll.u32 %s2391_s17, 4  ;;  %vm1643_vm7 = vcmask 253952  }
  0x17   : > { %1955 = vmatprep.subr.bf16.mxu1 %v2312_v1  ;;  %1961 = vmatprep.mubr.msk.bf16.mxu1 %vm2313_vm0, %v2312_v1  ;;  %v358_v8 = vld [vmem:[%s2450_s30] sm:$0xf]  ;;  %v2458_v9 = vld [vmem:[%s2450_s30 + $0x4] sm:$0xf]  ;;  %v2214_v22 = vld [vmem:[%s2834_s2 + $0x28] sm:$0xff]   ;;  %s2791_s11 = scalar_lea.hbm %s2842_s10, %s1847_s25  ;;  %s1646_s17 = scalar_lea.sflag [#allocation4], %s350_s20 }
  0x18   : > { %v1727_v11 = vcombine.low %v358_v8, %v2458_v9  ;;  %v359_v12 = vld [vmem:[%s2450_s30 + $0x4] sm:$0x7]  ;;  %v2215_v23 = vld [vmem:[%s2834_s2 + $0x8] sm:$0xff]   ;;  %v2218_v26 = vld [vmem:[%s2833_s1 + $0x58] sm:$0xff]   ;;  %p2253_p13 = pneg %p2252_p12  ;;  %s2314_s18 = smov [#allocation3]  }
  0x19   : > { %1944 = vmatpush3.bf16.msra.mxu0 %v2202_v3  ;;  %v1733_v16 = vcombine.low %v358_v8, %v359_v12  ;;  %v2216_v24 = vld [vmem:[%s2834_s2 + $0x20] sm:$0xff]   ;;  %v2219_v27 = vld [vmem:[%s2834_s2 + $0x58] sm:$0xff]   ;;  %v2220_v28 = vld [vmem:[%s2833_s1 + $0x50] sm:$0xff]  }
  0x1a   : > { %1956 = vmatpush3.bf16.msra.mxu1 %v2203_v4  ;;  %1945 = vmatprep.subr.bf16.mxu0 %v2312_v1  ;;  %v392_v13 = vshrl.u32 %v1727_v11, 16  ;;  %v394_v14 = vshll.u32 %v1727_v11, 16  ;;  %v2217_v25 = vld [vmem:[%s2834_s2] sm:$0xff]   ;;  %v2221_v29 = vld [vmem:[%s2834_s2 + $0x50] sm:$0xff]   ;;  %v2222_v30 = vld [vmem:[%s2833_s1 + $0x48] sm:$0xff]  }
  0x1b   : > { %1957 = vmatprep.subr.bf16.mxu1 %v2312_v1  ;;  %v677_v31 = vld [vmem:[%s2450_s30] sm:$0xe]  ;;  %v2223_v32 = vld [vmem:[%s2834_s2 + $0x48] sm:$0xff]   ;;  %v2227_v37 = vld [vmem:[%s2836_s4 + $0x34] ss:$0 sps:$4 sm:$0xff]   ;;  %s2254_s30 = sshll.u32 %s2314_s18, 4  ;;  %s2255_s30 = int_to_ptr.vmem [resolvable:$false] %s2254_s30 }
  0x1c   : > { %v396_v15 = vrot.slane %v394_v14, 1  ;;  %v1765_v33 = vcombine.low %v677_v31, %v2458_v9  ;;  %v2224_v34 = vld [vmem:[%s2833_s1 + $0x40] sm:$0xff]   ;;  %v2228_v38 = vld [vmem:[%s2836_s4 + $0x18] ss:$0 sps:$4 sm:$0xff]   ;;  %v2560_v39 = vsel %vm901_vm2, %v2227_v37, 0  ;;  %v2572_v41 = vld [vmem:[%s2836_s4 + $0x2c] sm:$0xff]   ;;  %p2257_p0 = scmp.lt.s32.totalorder %s2793_s27, %s2255_s30 }
  0x1d   : > { %1946 = vmatpush3.bf16.msra.mxu0 %v2204_v5  ;;  %v2225_v35 = vld [vmem:[%s2834_s2 + $0x40] sm:$0xff]   ;;  %v2563_v40 = vsel %vm901_vm2, %v2228_v38, 0  ;;  %v2577_v42 = vld [vmem:[%s2836_s4 + $0x10] sm:$0xff]   ;;  %v2591_v44 = vld [vmem:[%s2836_s4 + $0x8] sm:$0xff]   ;;  %s2256_s21 = scalar_lea.vmem %s2255_s30, 32 }
  0x1e   : > { %1958 = vmatpush3.bf16.msra.mxu1 %v2205_v6  ;;  %1947 = vmatprep.subr.bf16.mxu0 %v2312_v1  ;;  %v397_v18 = vor.u32 %v396_v15, %v392_v13  ;;  %v690_v36 = vrot.slane %v1765_v33, 1  ;;  %v2586_v43 = vld [vmem:[%s2836_s4 + $0x24] sm:$0xff]   ;;  %v2598_v45 = vld [vmem:[%s2836_s4 + $0x1c] sm:$0xff]   ;;  %p2258_p1 = scmp.lt.s32.totalorder %s2256_s21, %s2250_s12 }
  0x1f   : > { %1959 = vmatprep.subr.bf16.mxu1 %v2312_v1  ;;  %v2603_v46 = vld [vmem:[%s2836_s4] sm:$0xff]   ;;  %v2627_v33 = vld [vmem:[%s2836_s4 + $0x48] sm:$0xff]  }
  0x20   : > { %v1784_v8 = vld [vmem:[%s2835_s3] ss:$0 sm:$0xff]  ;;  %p2259_p2 = por %p2258_p1, %p2257_p0 }
  0x21   : > { %1948 = vmatpush3.bf16.msra.mxu0 %v2206_v7 }
  0x22   : > { %1960 = vmatpush3.bf16.msra.mxu1 %v2207_v10  ;;  %1965 = vmatprep.subr.bf16.mxu0 %v2312_v1  ;;  %p2260_p3 = pnand %p2259_p2, %p2253_p13 }
  0x23   : > { %1977 = vmatprep.subr.bf16.mxu1 %v2312_v1 }
  0x24   : > { %1950 = vmatmul.mubr.msk.bf16.vlgmr.msra.gmra.mxu0 %vm422_vm1, %v397_v18 }
  0x25   : > { %1962 = vmatmul.mubr.msk.bf16.vlgmr.msra.gmra.mxu1 %vm422_vm1, %v1733_v16  ;;  %1966 = vmatpush3.bf16.msra.mxu0 %v2210_v17 }
  0x26   : > { %1978 = vmatpush3.bf16.msra.mxu1 %v2211_v19  ;;  %1967 = vmatprep.subr.bf16.mxu0 %v2312_v1 }
  0x27   : > { %1979 = vmatprep.subr.bf16.mxu1 %v2312_v1  ;;  %1973 = vmatprep.mubr.msk.bf16.mxu0 %vm2313_vm0, %v2312_v1 }
  0x28   : > { %1985 = vmatprep.mubr.msk.bf16.mxu1 %vm2313_vm0, %v2312_v1 }
  0x29   : > { %1968 = vmatpush3.bf16.msra.mxu0 %v2212_v20 }
  0x2a   : > { %1980 = vmatpush3.bf16.msra.mxu1 %v2213_v21  ;;  %1969 = vmatprep.subr.bf16.mxu0 %v2312_v1 }
  0x2b   : > { %1981 = vmatprep.subr.bf16.mxu1 %v2312_v1 }
  0x2d   : > { %1970 = vmatpush3.bf16.msra.mxu0 %v2214_v22 }
  0x2e   : > { %1982 = vmatpush3.bf16.msra.mxu1 %v2215_v23  ;;  %1971 = vmatprep.subr.bf16.mxu0 %v2312_v1  ;;  %v2235_v23 = vld [vmem:[%s2836_s4 + $0x50] ss:$0 sps:$4 sm:$0xff]  }
  0x2f   : > { %1983 = vmatprep.subr.bf16.mxu1 %v2312_v1  ;;  %v2619_v31 = vsel %vm901_vm2, %v2235_v23, 0 }
  0x31   : > { %1972 = vmatpush3.bf16.msra.mxu0 %v2216_v24 }
  0x32   : > { %1984 = vmatpush3.bf16.msra.mxu1 %v2217_v25  ;;  %1989 = vmatprep.subr.bf16.mxu0 %v2312_v1 }
  0x33   : > { %2001 = vmatprep.subr.bf16.mxu1 %v2312_v1 }
  0x34   : > { %1974 = vmatmul.mubr.msk.bf16.vlgmr.msra.gmra.mxu0 %vm422_vm1, %v397_v18 }
  0x35   : > { %1986 = vmatmul.mubr.msk.bf16.vlgmr.msra.gmra.mxu1 %vm422_vm1, %v1733_v16  ;;  %1990 = vmatpush3.bf16.msra.mxu0 %v2218_v26 }
  0x36   : > { %2002 = vmatpush3.bf16.msra.mxu1 %v2219_v27  ;;  %1991 = vmatprep.subr.bf16.mxu0 %v2312_v1 }
  0x37   : > { %2003 = vmatprep.subr.bf16.mxu1 %v2312_v1  ;;  %1997 = vmatprep.mubr.msk.bf16.mxu0 %vm2313_vm0, %v2312_v1 }
  0x38   : > { %2009 = vmatprep.mubr.msk.bf16.mxu1 %vm2313_vm0, %v2312_v1 }
  0x39   : > { %1992 = vmatpush3.bf16.msra.mxu0 %v2220_v28 }
  0x3a   : > { %2004 = vmatpush3.bf16.msra.mxu1 %v2221_v29  ;;  %1993 = vmatprep.subr.bf16.mxu0 %v2312_v1 }
  0x3b   : > { %2005 = vmatprep.subr.bf16.mxu1 %v2312_v1 }
  0x3d   : > { %1994 = vmatpush3.bf16.msra.mxu0 %v2222_v30 }
  0x3e   : > { %2006 = vmatpush3.bf16.msra.mxu1 %v2223_v32  ;;  %1995 = vmatprep.subr.bf16.mxu0 %v2312_v1 }
  0x3f   : > { %2007 = vmatprep.subr.bf16.mxu1 %v2312_v1 }
  0x41   : > { %1996 = vmatpush3.bf16.msra.mxu0 %v2224_v34  ;;  %v2640_v34 = vld [vmem:[%s2836_s4 + $0x40] sm:$0xff]  }
  0x42   : > { %2008 = vmatpush3.bf16.msra.mxu1 %v2225_v35  ;;  %2013 = vmatprep.subr.bf16.mxu0 %v2312_v1 }
  0x43   : > { %2025 = vmatprep.subr.bf16.mxu1 %v2312_v1 }
  0x44   : > { %1998 = vmatmul.mubr.msk.bf16.vlgmr.msra.gmra.mxu0 %vm422_vm1, %v690_v36 }
  0x45   : > { %2010 = vmatmul.mubr.msk.bf16.vlgmr.msra.gmra.mxu1 %vm422_vm1, %v690_v36  ;;  %2021 = vmatprep.mubr.msk.bf16.mxu0 %vm2313_vm0, %v2312_v1 }
  0x46   : > { %2033 = vmatprep.mubr.msk.bf16.mxu1 %vm2313_vm0, %v2312_v1  ;;  %2014 = vmatpush3.bf16.msra.mxu0 %v2560_v39 }
  0x47   : > { %2026 = vmatpush3.bf16.msra.mxu1 %v2563_v40  ;;  %2015 = vmatprep.subr.bf16.mxu0 %v2312_v1 }
  0x48   : > { %2027 = vmatprep.subr.bf16.mxu1 %v2312_v1 }
  0x4a   : > { %2016 = vmatpush3.bf16.msra.mxu0 %v2572_v41 }
  0x4b   : > { %2028 = vmatpush3.bf16.msra.mxu1 %v2577_v42  ;;  %2017 = vmatprep.subr.bf16.mxu0 %v2312_v1 }
  0x4c   : > { %2029 = vmatprep.subr.bf16.mxu1 %v2312_v1 }
  0x4e   : > { %2018 = vmatpush3.bf16.msra.mxu0 %v2586_v43 }
  0x4f   : > { %2030 = vmatpush3.bf16.msra.mxu1 %v2591_v44  ;;  %2019 = vmatprep.subr.bf16.mxu0 %v2312_v1 }
  0x50   : > { %2031 = vmatprep.subr.bf16.mxu1 %v2312_v1 }
  0x52   : > { %2020 = vmatpush3.bf16.msra.mxu0 %v2598_v45 }
  0x53   : > { %2032 = vmatpush3.bf16.msra.mxu1 %v2603_v46  ;;  %2037 = vmatprep.subr.bf16.mxu0 %v2312_v1 }
  0x54   : > { %2049 = vmatprep.subr.bf16.mxu1 %v2312_v1 }
  0xe4   : > { %v460_v47 = vpop.f32.mrf.mxu0 }
  0xe5   : > { %v531_v48 = vpop.f32.mrf.mxu1 }
  0xe6   : > { %v1951_v49 = vpop.f32.mrf.mxu0  ;;  %v532_v63 = vadd.f32 %v531_v48, %v460_v47  ;;  %v2649_v47 = vld [vmem:[%s2836_s4 + $0x38] sm:$0xff]  }
  0xe7   : > { %v1963_v50 = vpop.f32.mrf.mxu1 }
  0xe8   : > { %v463_v51 = vpop.f32.mrf.mxu0 }
  0xe9   : > { %v534_v52 = vpop.f32.mrf.mxu1 }
  0xea   : > { %v1952_v53 = vpop.f32.mrf.mxu0  ;;  %v535_v7 = vadd.f32 %v534_v52, %v463_v51 }
  0xeb   : > { %v1964_v54 = vpop.f32.mrf.mxu1 }
  0xf4   : > { %v605_v55 = vpop.f32.mrf.mxu0 }
  0xf5   : > { %v670_v56 = vpop.f32.mrf.mxu1 }
  0xf6   : > { %v1975_v57 = vpop.f32.mrf.mxu0  ;;  %v671_v0 = vadd.f32 %v670_v56, %v605_v55  ;;  %v2239_v56 = vld [vmem:[%s2838_s6 + $0x10] sm:$0xff]  }
  0xf7   : > { %v1987_v58 = vpop.f32.mrf.mxu1  ;;  %v2240_v57 = vld [vmem:[%s2838_s6 + $0x8] sm:$0xff]  }
  0xf8   : > { %v608_v59 = vpop.f32.mrf.mxu0  ;;  %v2241_v58 = vld [vmem:[%s2838_s6] sm:$0xff]  }
  0xf9   : > { %v673_v60 = vpop.f32.mrf.mxu1 }
  0xfa   : > { %v1976_v61 = vpop.f32.mrf.mxu0  ;;  %v674_v10 = vadd.f32 %v673_v60, %v608_v59  ;;  %v2242_v59 = vld [vmem:[%s2838_s6 + $0x28] sm:$0xff]   ;;  %v2243_v60 = vld [vmem:[%s2838_s6 + $0x20] sm:$0xff]  }
  0xfb   : > { %v1988_v62 = vpop.f32.mrf.mxu1  ;;  %v2244_v61 = vld [vmem:[%s2838_s6 + $0x18] sm:$0xff]  }
 0x104   : > { %v752_v2 = vpop.f32.mrf.mxu0 }
 0x105   : > { %v759_v3 = vadd.f32 %v752_v2, %v532_v63  ;;  %v828_v4 = vpop.f32.mrf.mxu1 }
 0x106   : > { %v835_v5 = vadd.f32 %v828_v4, %v671_v0  ;;  %v1999_v6 = vpop.f32.mrf.mxu0 }
 0x107   : > { %v2011_v9 = vpop.f32.mrf.mxu1 }
 0x108   : > { %v837_v11 = vmax.f32 %v759_v3, %v835_v5  ;;  %v755_v12 = vpop.f32.mrf.mxu0  ;;  %v2716_v9 = vld [vmem:[%s2837_s5] sm:$0x1] }
 0x109   : > { %v760_v13 = vadd.f32 %v755_v12, %v535_v7  ;;  %v831_v14 = vpop.f32.mrf.mxu1 }
 0x10a   : > { %v846_v15 = vadd.f32 %v1784_v8, %v837_v11  ;;  %v836_v16 = vadd.f32 %v831_v14, %v674_v10  ;;  %v2000_v17 = vpop.f32.mrf.mxu0 }
 0x10b   : > { %v2012_v18 = vpop.f32.mrf.mxu1 }
 0x10c   : > { %v848_v19 = vmax.f32 %v846_v15, 0.0  ;;  %v838_v20 = vmax.f32 %v760_v13, %v836_v16 }
 0x10e   : > { %851 = vst.msk [vmem:[#allocation2] sm:$0xff] %vm850_vm3, %v848_v19  ;;  %v847_v21 = vadd.f32 %v1784_v8, %v838_v20 }
 0x110   : > { %v849_v22 = vmax.f32 %v847_v21, 0.0 }
 0x112   : > { %853 = vst.msk [vmem:[#allocation2 + $0x8] sm:$0x3f] %vm852_vm4, %v849_v22 }
 0x115   : > { %v865_v24 = vld [vmem:[#allocation2 + $0x2] sm:$0x1]  ;;  %v866_v25 = vld [vmem:[#allocation2 + $0x3] sm:$0x1]  ;;  %v854_v26 = vld [vmem:[#allocation2] sm:$0x1] }
 0x116   : > { %v867_v27 = vmax.f32 %v865_v24, %v866_v25  ;;  %v855_v28 = vld [vmem:[#allocation2 + $0x1] sm:$0x1]  ;;  %v1012_v35 = vld [vmem:[#allocation2 + $0x4] sm:$0x1]  ;;  %v1013_v36 = vld [vmem:[#allocation2 + $0x5] sm:$0x1] }
 0x117   : > { %v856_v29 = vmax.f32 %v854_v26, %v855_v28  ;;  %v1102_v37 = vld [vmem:[#allocation2 + $0x6] sm:$0x1]  ;;  %v1103_v38 = vld [vmem:[#allocation2 + $0x7] sm:$0x1]  ;;  %v1014_v48 = vmax.f32 %v1012_v35, %v1013_v36 }
 0x118   : > { %v868_v30 = vpack.c.bf16 %v867_v27, %v867_v27  ;;  %v1104_v49 = vmax.f32 %v1102_v37, %v1103_v38 }
 0x119   : > { %v857_v32 = vpack.c.bf16 %v856_v29, %v856_v29  ;;  %v1015_v50 = vpack.c.bf16 %v1014_v48, %v1014_v48  ;;  %v1189_v52 = vld [vmem:[#allocation2 + $0x8] sm:$0x1]  ;;  %v1190_v53 = vld [vmem:[#allocation2 + $0x9] sm:$0x1] }
 0x11a   : > { %2022 = vmatmul.mubr.msk.bf16.vlgmr.msra.gmra.mxu0 %vm850_vm3, %v868_v30  ;;  %v1105_v51 = vpack.c.bf16 %v1104_v49, %v1104_v49  ;;  %v1191_v54 = vmax.f32 %v1189_v52, %v1190_v53 }
 0x11b   : > { %2034 = vmatmul.mubr.msk.bf16.vlgmr.msra.gmra.mxu1 %vm850_vm3, %v857_v32  ;;  %2038 = vmatpush3.bf16.msra.mxu0 %v2619_v31 }
 0x11c   : > { %2050 = vmatpush3.bf16.msra.mxu1 %v2560_v39  ;;  %2039 = vmatprep.subr.bf16.mxu0 %v2312_v1  ;;  %v2679_v55 = vpack.c.bf16 %v1191_v54, %v1191_v54 }
 0x11d   : > { %2051 = vmatprep.subr.bf16.mxu1 %v2312_v1  ;;  %2045 = vmatprep.mubr.msk.bf16.mxu0 %vm2313_vm0, %v2312_v1 }
 0x11e   : > { %2057 = vmatprep.mubr.msk.bf16.mxu1 %vm2313_vm0, %v2312_v1 }
 0x11f   : > { %2040 = vmatpush3.bf16.msra.mxu0 %v2627_v33 }
 0x120   : > { %2052 = vmatpush3.bf16.msra.mxu1 %v2572_v41  ;;  %2041 = vmatprep.subr.bf16.mxu0 %v2312_v1 }
 0x121   : > { %2053 = vmatprep.subr.bf16.mxu1 %v2312_v1 }
 0x123   : > { %2042 = vmatpush3.bf16.msra.mxu0 %v2640_v34 }
 0x124   : > { %2054 = vmatpush3.bf16.msra.mxu1 %v2586_v43  ;;  %2043 = vmatprep.subr.bf16.mxu0 %v2312_v1 }
 0x125   : > { %2055 = vmatprep.subr.bf16.mxu1 %v2312_v1 }
 0x127   : > { %2044 = vmatpush3.bf16.msra.mxu0 %v2649_v47 }
 0x128   : > { %2056 = vmatpush3.bf16.msra.mxu1 %v2598_v45  ;;  %2061 = vmatprep.subr.bf16.mxu0 %v2312_v1 }
 0x129   : > { %2073 = vmatprep.subr.bf16.mxu1 %v2312_v1 }
 0x12a   : > { %2046 = vmatmul.mubr.msk.bf16.vlgmr.msra.gmra.mxu0 %vm850_vm3, %v1015_v50 }
 0x12b   : > { %2058 = vmatmul.mubr.msk.bf16.vlgmr.msra.gmra.mxu1 %vm850_vm3, %v1105_v51  ;;  %2062 = vmatpush3.bf16.msra.mxu0 %v2563_v40 }
 0x12c   : > { %2074 = vmatpush3.bf16.msra.mxu1 %v2619_v31  ;;  %2063 = vmatprep.subr.bf16.mxu0 %v2312_v1 }
 0x12d   : > { %2075 = vmatprep.subr.bf16.mxu1 %v2312_v1  ;;  %2069 = vmatprep.mubr.msk.bf16.mxu0 %vm2313_vm0, %v2312_v1 }
 0x12e   : > { %2081 = vmatprep.mubr.msk.bf16.mxu1 %vm2313_vm0, %v2312_v1 }
 0x12f   : > { %2064 = vmatpush3.bf16.msra.mxu0 %v2577_v42 }
 0x130   : > { %2076 = vmatpush3.bf16.msra.mxu1 %v2627_v33  ;;  %2065 = vmatprep.subr.bf16.mxu0 %v2312_v1 }
 0x131   : > { %2077 = vmatprep.subr.bf16.mxu1 %v2312_v1 }
 0x133   : > { %2066 = vmatpush3.bf16.msra.mxu0 %v2591_v44 }
 0x134   : > { %2078 = vmatpush3.bf16.msra.mxu1 %v2640_v34  ;;  %2067 = vmatprep.subr.bf16.mxu0 %v2312_v1 }
 0x135   : > { %2079 = vmatprep.subr.bf16.mxu1 %v2312_v1 }
 0x137   : > { %2068 = vmatpush3.bf16.msra.mxu0 %v2603_v46 }
 0x138   : > { %2080 = vmatpush3.bf16.msra.mxu1 %v2649_v47  ;;  %2085 = vmatprep.subr.bf16.mxu0 %v2312_v1 }
 0x139   : > { %2095 = vmatprep.subr.bf16.mxu1 %v2312_v1 }
 0x13a   : > { %2070 = vmatmul.mubr.msk.bf16.vlgmr.msra.gmra.mxu0 %vm850_vm3, %v1015_v50 }
 0x13b   : > { %2082 = vmatmul.mubr.msk.bf16.vlgmr.msra.gmra.mxu1 %vm850_vm3, %v2679_v55  ;;  %2091 = vmatprep.mubr.msk.bf16.mxu0 %vm2313_vm0, %v2312_v1 }
 0x13c   : > { %2101 = vmatprep.mubr.msk.bf16.mxu1 %vm2313_vm0, %v2312_v1  ;;  %2096 = vmatpush3.bf16.msra.mxu1 %v2239_v56 }
 0x13d   : > { %2097 = vmatprep.subr.bf16.mxu1 %v2312_v1  ;;  %2086 = vmatpush3.bf16.msra.mxu0 %v2242_v59 }
 0x13e   : > { %2087 = vmatprep.subr.bf16.mxu0 %v2312_v1 }
 0x140   : > { %2098 = vmatpush3.bf16.msra.mxu1 %v2240_v57 }
 0x141   : > { %2099 = vmatprep.subr.bf16.mxu1 %v2312_v1  ;;  %2088 = vmatpush3.bf16.msra.mxu0 %v2243_v60 }
 0x142   : > { %2089 = vmatprep.subr.bf16.mxu0 %v2312_v1 }
 0x144   : > { %2100 = vmatpush3.bf16.msra.mxu1 %v2241_v58 }
 0x145   : > { %2117 = vmatprep.subr.bf16.mxu1 %v2312_v1  ;;  %2090 = vmatpush3.bf16.msra.mxu0 %v2244_v61 }
 0x146   : > { %2105 = vmatprep.subr.bf16.mxu0 %v2312_v1 }
 0x1da   : > { %v939_v62 = vpop.f32.mrf.mxu0 }
 0x1db   : > { %v1006_v63 = vpop.f32.mrf.mxu1 }
 0x1dc   : > { %v2023_v0 = vpop.f32.mrf.mxu0  ;;  %v1007_v7 = vadd.f32 %v1006_v63, %v939_v62 }
 0x1dd   : > { %v2035_v2 = vpop.f32.mrf.mxu1 }
 0x1de   : > { %v942_v3 = vpop.f32.mrf.mxu0 }
 0x1df   : > { %v1009_v4 = vpop.f32.mrf.mxu1 }
 0x1e0   : > { %v2024_v5 = vpop.f32.mrf.mxu0 }
 0x1e1   : > { %v2036_v6 = vpop.f32.mrf.mxu1 }
 0x1ea   : > { %v1085_v8 = vpop.f32.mrf.mxu0 }
 0x1eb   : > { %v1091_v10 = vadd.f32 %v1085_v8, %v1007_v7  ;;  %v1143_v11 = vpop.f32.mrf.mxu1  ;;  %v2248_v8 = vld [vmem:[%s2840_s8 + $0x8] sm:$0xff]  }
 0x1ec   : > { %v2047_v12 = vpop.f32.mrf.mxu0 }
 0x1ed   : > { %v1093_v13 = vadd.f32 %v2716_v9, %v1091_v10  ;;  %v2059_v14 = vpop.f32.mrf.mxu1 }
 0x1ee   : > { %v1088_v15 = vpop.f32.mrf.mxu0 }
 0x1ef   : > { %v1094_v16 = vmax.f32 %v1093_v13, 0.0  ;;  %v1146_v17 = vpop.f32.mrf.mxu1 }
 0x1f0   : > { %v2048_v18 = vpop.f32.mrf.mxu0 }
 0x1f1   : > { %v1095_v19 = vpack.c.bf16 %v1094_v16, %v1094_v16  ;;  %v2060_v20 = vpop.f32.mrf.mxu1 }
 0x1f3   : > { %2102 = vmatmul.mubr.msk.bf16.vlgmr.msra.gmra.mxu1 %vm1265_vm5, %v1095_v19 }
 0x1f4   : > { %2118 = vmatpush3.bf16.msra.mxu1 %v2563_v40  ;;  %2125 = vmatprep.mubr.msk.bf16.mxu1 %vm2313_vm0, %v2312_v1 }
 0x1f5   : > { %2119 = vmatprep.subr.bf16.mxu1 %v2312_v1 }
 0x1f8   : > { %2120 = vmatpush3.bf16.msra.mxu1 %v2577_v42 }
 0x1f9   : > { %2121 = vmatprep.subr.bf16.mxu1 %v2312_v1 }
 0x1fa   : > { %v1183_v21 = vpop.f32.mrf.mxu0 }
 0x1fb   : > { %v1184_v22 = vadd.f32 %v1183_v21, %v1143_v11  ;;  %v1230_v23 = vpop.f32.mrf.mxu1  ;;  %v1577_v11 = vld [vmem:[%s2839_s7] sm:$0x1] }
 0x1fc   : > { %2122 = vmatpush3.bf16.msra.mxu1 %v2591_v44  ;;  %v2071_v24 = vpop.f32.mrf.mxu0  ;;  %v1370_v44 = vld [vmem:[#allocation2 + $0xa] sm:$0x1] }
 0x1fd   : > { %v1236_v25 = vadd.f32 %v1230_v23, %v1184_v22  ;;  %v2083_v26 = vpop.f32.mrf.mxu1  ;;  %2123 = vmatprep.subr.bf16.mxu1 %v2312_v1 }
 0x1fe   : > { %v1186_v40 = vpop.f32.mrf.mxu0 }
 0x1ff   : > { %v1237_v27 = vadd.f32 %v1236_v25, %v2716_v9  ;;  %v1233_v28 = vpop.f32.mrf.mxu1 }
 0x200   : > { %2124 = vmatpush3.bf16.msra.mxu1 %v2603_v46  ;;  %v2072_v29 = vpop.f32.mrf.mxu0  ;;  %v1371_v46 = vld [vmem:[#allocation2 + $0xb] sm:$0x1] }
 0x201   : > { %v1238_v42 = vmax.f32 %v1237_v27, 0.0  ;;  %v2084_v30 = vpop.f32.mrf.mxu1  ;;  %2141 = vmatprep.subr.bf16.mxu1 %v2312_v1  ;;  %v1372_v35 = vmax.f32 %v1370_v44, %v1371_v46 }
 0x203   : > { %v1239_v32 = vpack.c.bf16 %v1238_v42, %v1238_v42  ;;  %2126 = vmatmul.mubr.msk.bf16.vlgmr.msra.gmra.mxu1 %vm850_vm3, %v2679_v55  ;;  %v1373_v36 = vpack.c.bf16 %v1372_v35, %v1372_v35 }
 0x204   : > { %2147 = vmatprep.mubr.msk.bf16.mxu1 %vm2313_vm0, %v2312_v1 }
 0x205   : > { %2092 = vmatmul.mubr.msk.bf16.vlgmr.msra.gmra.mxu0 %vm1265_vm5, %v1239_v32 }
 0x206   : > { %2106 = vmatpush3.bf16.msra.mxu0 %v2560_v39  ;;  %2113 = vmatprep.mubr.msk.bf16.mxu0 %vm2313_vm0, %v2312_v1  ;;  %v1457_v39 = vld [vmem:[#allocation2 + $0xc] sm:$0x1] }
 0x207   : > { %2107 = vmatprep.subr.bf16.mxu0 %v2312_v1 }
 0x20a   : > { %2108 = vmatpush3.bf16.msra.mxu0 %v2572_v41  ;;  %v1458_v41 = vld [vmem:[#allocation2 + $0xd] sm:$0x1] }
 0x20b   : > { %2109 = vmatprep.subr.bf16.mxu0 %v2312_v1 }
 0x20e   : > { %2110 = vmatpush3.bf16.msra.mxu0 %v2586_v43  ;;  %v1459_v43 = vmax.f32 %v1457_v39, %v1458_v41 }
 0x20f   : > { %2111 = vmatprep.subr.bf16.mxu0 %v2312_v1 }
 0x212   : > { %2112 = vmatpush3.bf16.msra.mxu0 %v2598_v45  ;;  %v1460_v45 = vpack.c.bf16 %v1459_v43, %v1459_v43 }
 0x213   : > { %2129 = vmatprep.subr.bf16.mxu0 %v2312_v1 }
 0x215   : > { %2114 = vmatmul.mubr.msk.bf16.vlgmr.msra.gmra.mxu0 %vm850_vm3, %v1373_v36 }
 0x216   : > { %2130 = vmatpush3.bf16.msra.mxu0 %v2619_v31  ;;  %2137 = vmatprep.mubr.msk.bf16.mxu0 %vm2313_vm0, %v2312_v1  ;;  %v2245_v31 = vld [vmem:[%s2838_s6 + $0x40] sm:$0xff]  }
 0x217   : > { %2131 = vmatprep.subr.bf16.mxu0 %v2312_v1  ;;  %2142 = vmatpush3.bf16.msra.mxu1 %v2245_v31 }
 0x218   : > { %2143 = vmatprep.subr.bf16.mxu1 %v2312_v1 }
 0x21a   : > { %2132 = vmatpush3.bf16.msra.mxu0 %v2627_v33  ;;  %v2246_v33 = vld [vmem:[%s2838_s6 + $0x38] sm:$0xff]  }
 0x21b   : > { %2133 = vmatprep.subr.bf16.mxu0 %v2312_v1  ;;  %2144 = vmatpush3.bf16.msra.mxu1 %v2246_v33 }
 0x21c   : > { %2145 = vmatprep.subr.bf16.mxu1 %v2312_v1 }
 0x21e   : > { %2134 = vmatpush3.bf16.msra.mxu0 %v2640_v34  ;;  %v2247_v34 = vld [vmem:[%s2838_s6 + $0x30] sm:$0xff]  }
 0x21f   : > { %2135 = vmatprep.subr.bf16.mxu0 %v2312_v1  ;;  %2146 = vmatpush3.bf16.msra.mxu1 %v2247_v34 }
 0x220   : > { %2151 = vmatprep.subr.bf16.mxu1 %v2312_v1 }
 0x222   : > { %2136 = vmatpush3.bf16.msra.mxu0 %v2649_v47 }
 0x225   : > { %2138 = vmatmul.mubr.msk.bf16.vlgmr.msra.gmra.mxu0 %vm850_vm3, %v1460_v45 }
 0x2b3   : > { %v1364_v37 = vpop.f32.mrf.mxu1 }
 0x2b5   : > { %v2103_v38 = vpop.f32.mrf.mxu1 }
 0x2b7   : > { %v1367_v47 = vpop.f32.mrf.mxu1 }
 0x2b9   : > { %v2104_v48 = vpop.f32.mrf.mxu1 }
 0x2c3   : > { %v1451_v49 = vpop.f32.mrf.mxu1 }
 0x2c5   : > { %v2127_v50 = vpop.f32.mrf.mxu1  ;;  %v1303_v51 = vpop.f32.mrf.mxu0 }
 0x2c6   : > { %v1365_v52 = vadd.f32 %v1364_v37, %v1303_v51 }
 0x2c7   : > { %v1454_v53 = vpop.f32.mrf.mxu1  ;;  %v2093_v54 = vpop.f32.mrf.mxu0 }
 0x2c9   : > { %v2128_v55 = vpop.f32.mrf.mxu1  ;;  %v1306_v56 = vpop.f32.mrf.mxu0 }
 0x2cb   : > { %v2094_v57 = vpop.f32.mrf.mxu0 }
 0x2d5   : > { %v1411_v58 = vpop.f32.mrf.mxu0 }
 0x2d6   : > { %v1452_v62 = vadd.f32 %v1451_v49, %v1411_v58 }
 0x2d7   : > { %v2115_v59 = vpop.f32.mrf.mxu0 }
 0x2d9   : > { %v1414_v60 = vpop.f32.mrf.mxu0 }
 0x2db   : > { %v2116_v61 = vpop.f32.mrf.mxu0 }
 0x2e5   : > { %v1498_v63 = vpop.f32.mrf.mxu0 }
 0x2e6   : > { %v1504_v0 = vadd.f32 %v1498_v63, %v1452_v62 }
 0x2e7   : > { %v2139_v2 = vpop.f32.mrf.mxu0 }
 0x2e8   : > { %v1505_v3 = vadd.f32 %v1504_v0, %v2716_v9  ;;  %v2249_v9 = vld [vmem:[%s2840_s8] sm:$0xff]  }
 0x2e9   : > { %v1501_v4 = vpop.f32.mrf.mxu0 }
 0x2ea   : > { %v1506_v5 = vmax.f32 %v1505_v3, 0.0 }
 0x2eb   : > { %v2140_v6 = vpop.f32.mrf.mxu0 }
 0x2ec   : > { %v1507_v7 = vpack.c.bf16 %v1506_v5, %v1506_v5 }
 0x2ee   : > { %2148 = vmatmul.mubr.msk.bf16.vlgmr.msra.gmra.mxu1 %vm1265_vm5, %v1507_v7 }
 0x2ef   : > { %2155 = vmatprep.mubr.msk.bf16.mxu1 %vm2313_vm0, %v2312_v1  ;;  %2152 = vmatpush3.bf16.msra.mxu1 %v2248_v8 }
 0x2f0   : > { %2153 = vmatprep.subr.bf16.mxu1 %v2312_v1  ;;  %v1585_v1 = vld [vmem:[%s2841_s9] sm:$0x1] }
 0x2f3   : > { %2154 = vmatpush3.bf16.msra.mxu1 %v2249_v9 }
 0x3ae   : > { %v1570_v10 = vpop.f32.mrf.mxu1 }
 0x3af   : > { %v1576_v12 = vadd.f32 %v1570_v10, %v1365_v52 }
 0x3b0   : > { %v2149_v13 = vpop.f32.mrf.mxu1 }
 0x3b1   : > { %v1578_v14 = vadd.f32 %v1577_v11, %v1576_v12 }
 0x3b2   : > { %v1573_v15 = vpop.f32.mrf.mxu1 }
 0x3b3   : > { %v1579_v16 = vmax.f32 %v1578_v14, 0.0 }
 0x3b4   : > { %v2150_v17 = vpop.f32.mrf.mxu1 }
 0x3b5   : > { %v1580_v18 = vpack.c.bf16 %v1579_v16, %v1579_v16 }
 0x3b7   : > { %2156 = vmatmul.mubr.msk.bf16.vlgmr.msra.gmra.mxu1 %vm1598_vm6, %v1580_v18 }
 0x477   : > { %v1636_v19 = vpop.f32.mrf.mxu1 }
 0x478   : > { %v1637_v20 = vadd.f32 %v1636_v19, %v1585_v1 }
 0x479   : > { %v2157_v21 = vpop.f32.mrf.mxu1 }
 0x47a   : > { %v1642_v22 = vmax.f32 %v1637_v20, 0.0 }
 0x47b   : > { %v1639_v23 = vpop.f32.mrf.mxu1 }
 0x47c   : > { %1644 = vst.msk [vmem:[%s351_s26] sm:$0x1] %vm1643_vm7, %v1642_v22 }
 0x47d   : > { %v2158_v24 = vpop.f32.mrf.mxu1 }
 0x47e   : > { %2263 = shalt.err (!%p2260_p3)
}
 0x47f   : > { %s2264_s25 = scalar_lea.hbm %s2791_s11, 16  ;;  %s2268_s28 = scalar_lea.hbm %s2842_s10, 32 }
 0x480   : > { %p2265_p4 = scmp.ne.s32.totalorder %s2791_s11, %s2264_s25  ;;  %p2269_p9 = scmp.lt.s32.totalorder %s2791_s11, %s2842_s10 }
 0x481   : > { %p2270_p10 = scmp.lt.s32.totalorder %s2268_s28, %s2264_s25 }
 0x482   : > { %p2266_p7 = pnand %p2265_p4, %p2408_p5 }
 0x483   : > { %p2271_p11 = por %p2270_p10, %p2269_p9 }
 0x484   : > { %p2267_p8 = pneg %p2266_p7 }
 0x486   : > { %p2272_p12 = pnand %p2271_p11, %p2267_p8 }
 0x488   : > { %2275 = shalt.err (!%p2272_p12)
}
 0x489   : > { %2159 = dma.vmem_to_hbm [thread:$0]  (%p2408_p5), %s2793_s27, 16, %s2791_s11, %s1646_s17  }
 0x48a PF: > { %p2165_p13 = scmp.ge.s32.totalorder %s2310_s16, 2  ;;  %s1670_s12 = sand.u32 1, %s2298_s13  }
 0x48b   : > { %s1671_s30 = scalar_lea.sflag [#allocation4], %s1670_s12 }
 0x48c   : > { %p2162_p0 = pnand %p2165_p13, %p2412_p6 }
 0x48e   : > { %p2163_p1 = pneg %p2162_p0 }
 0x490   : > { %2293 = dma.done.wait (%p2163_p1), %s1671_s30, 16  }
 0x491   : > { %2295 = vsyncadd (%p2163_p1), %s1671_s30, 4294967280  ;;  %p20_p2 = scmp.ge.s32.totalorder %s2395_s19, 4   ;;  %s2845_s13 = smov %s2302_s14 }
 0x492   : > { %s2846_s14 = smov %s2306_s15  ;;  %s2847_s15 = smov %s2406_s22 }
 0x493   : > { %s2848_s16 = smov %s2395_s19  ;;  %22 = sbr.rel (!%p20_p2) target bundleno = 3 (0x3), region = 103 }
 0x498   :  { %1675 = vsyncpa [#allocation4], 1 }
 0x499   :  { %1677 = vsyncpa [#allocation4 + $0x1], 1 }

</bundles_post_ra>
